<compile_context>
chip_gen: v5e
topology: v5e:2x2
jax: 0.10.0
libtpu: 0.0.40
codegen_flags: <defaults>
</compile_context>

<pallas_src>
import functools

import jax
import jax.numpy as jnp
from jax.experimental import pallas as pl
from jax.experimental.pallas import tpu as pltpu


def _classifier_kernel(d1_ref, d2_ref, e1_ref, e2_ref, w_ref, b_ref, out_ref):
    """VPU multiply + XLU lane reduce: Linear(4E, 1) over [d1|d2|e1|e2]."""
    w = w_ref[...]                                           # (4, E) f32, resident
    acc = (d1_ref[...].astype(jnp.float32) * w[0:1, :]
           + d2_ref[...].astype(jnp.float32) * w[1:2, :]
           + e1_ref[...].astype(jnp.float32) * w[2:3, :]
           + e2_ref[...].astype(jnp.float32) * w[3:4, :])    # (TB, E)
    logits = jnp.sum(acc, axis=-1, keepdims=True) + b_ref[0]  # (TB, 1)
    # Lane-dense store: (1, TB) block of the (1, B) output.
    out_ref[...] = logits.T.astype(out_ref.dtype)


def _round_up(x, m):
    return ((x + m - 1) // m) * m


def _select_tile(B, E, itemsize, block_b):
    """Pick the batch tile TB (multiple of 128 when tiled) and block count."""
    if B <= 128:
        return B, 1                       # single block == full dims (any B)
    block_b = max(128, (block_b // 128) * 128)
    # Keep 4 inputs x 2 pipeline buffers under ~40 MiB (v7x has 64 MiB VMEM/TC).
    budget = 40 * 1024 * 1024
    rows_cap = budget // (4 * 2 * E * itemsize)
    tb_cap = max(128, (rows_cap // 128) * 128)
    # Aim for nb >= 2 so the "parallel" batch axis can split across v7x's 2 TCs.
    tb_target = _round_up(pl.cdiv(B, 2), 128)
    tb = max(128, min(block_b, tb_cap, tb_target))
    nb = pl.cdiv(B, tb)
    return tb, nb


@functools.partial(jax.jit, static_argnames=("block_b",))
def author_classifier_forward(dist_emb1, dist_emb2, emb1, emb2, weight, bias,
                              *, block_b=1024):
    """Pallas-backed equivalent of AuthorClassifier.forward's classifier head.

    Args:
      dist_emb1, dist_emb2: [B, E] outputs of the (frozen) dual encoder
                            (bf16 or f32; bf16 recommended — the kernel widens
                            to f32 internally for the accumulate).
      emb1, emb2:           [B, E] DeBERTa pooled [CLS] embeddings.
      weight:               classifier weight, PyTorch nn.Linear layout [1, 4*E]
                            or pre-transposed [4*E, 1].
      bias:                 classifier bias (scalar, [1] or [1, 1]).
      block_b:              max batch tile size (multiple of 128).

    Returns:
      logits: [B, 1] float32.
    """
    B, E = dist_emb1.shape
    assert dist_emb2.shape == (B, E)
    assert emb1.shape == (B, E)
    assert emb2.shape == (B, E)

    weight = jnp.asarray(weight)
    assert weight.size == 4 * E, "classifier weight must have 4*E elements"
    # Torch layout [1, 4E] or [4E, 1]; both flatten identically, row k of the
    # (4, E) slab matches concat segment k.
    w4 = weight.reshape(4, E).astype(jnp.float32)
    b = jnp.asarray(bias, dtype=jnp.float32).reshape(1)

    itemsize = jnp.dtype(dist_emb1.dtype).itemsize
    tb, nb = _select_tile(B, E, itemsize, block_b)

    emb_spec = pl.BlockSpec((tb, E), lambda i: (i, 0))
    w_spec = pl.BlockSpec((4, E), lambda i: (0, 0))              # resident
    b_spec = pl.BlockSpec(memory_space=pltpu.MemorySpace.SMEM)   # scalar path
    out_spec = pl.BlockSpec((1, tb), lambda i: (0, i))           # lane-dense

    # Generation-aware VMEM limit: double-buffered inputs + weight + output,
    # plus margin; stays well under v7x's 64 MiB/TC by construction of tb.
    in_bytes = 4 * 2 * tb * E * itemsize
    w_bytes = 2 * 4 * E * 4
    out_bytes = 2 * tb * 4
    vmem_limit = int(min(max(in_bytes + w_bytes + out_bytes + (8 << 20),
                             32 << 20), 100 << 20))

    cost = pl.CostEstimate(
        flops=8 * B * E,                        # 4 muls + 4 adds per (row, lane)
        transcendentals=0,
        bytes_accessed=4 * B * E * itemsize + 4 * E * 4 + 4 + B * 4,
    )

    logits_row = pl.pallas_call(
        _classifier_kernel,
        out_shape=jax.ShapeDtypeStruct((1, B), jnp.float32),
        grid=(nb,),
        in_specs=[emb_spec, emb_spec, emb_spec, emb_spec, w_spec, b_spec],
        out_specs=out_spec,
        compiler_params=pltpu.CompilerParams(
            dimension_semantics=("parallel",),
            vmem_limit_bytes=vmem_limit,
        ),
        cost_estimate=cost,
    )(dist_emb1, dist_emb2, emb1, emb2, w4, b)

    return logits_row.reshape(B, 1)


def _reference(dist_emb1, dist_emb2, emb1, emb2, weight, bias):
    concat = jnp.concatenate(
        [x.astype(jnp.float32) for x in (dist_emb1, dist_emb2, emb1, emb2)],
        axis=1)
    w = jnp.asarray(weight, jnp.float32).reshape(1, -1)
    return (jnp.sum(concat * w, axis=1, keepdims=True)
            + jnp.asarray(bias, jnp.float32).reshape(()))


if __name__ == "__main__":
    # Small deterministic shapes consistent with the module:
    # embedding_size = 128 (stand-in for DeBERTa's 768).
    E = 128
    key = jax.random.PRNGKey(0)

    def make_inputs(B, k):
        k_d1, k_d2, k_e1, k_e2, k_w, k_b = jax.random.split(k, 6)
        # Stand-ins for dual_encoder / DeBERTa pooled [CLS] outputs (bf16).
        mk = lambda kk: jax.random.normal(kk, (B, E), jnp.float32).astype(jnp.bfloat16)
        d1, d2, e1, e2 = mk(k_d1), mk(k_d2), mk(k_e1), mk(k_e2)
        # nn.Linear(4E, 1): weight [out, in] = [1, 4E], uniform(+/- 1/sqrt(fan_in)).
        fan_in = 4 * E
        bound = 1.0 / float(fan_in) ** 0.5
        w = jax.random.uniform(k_w, (1, 4 * E), jnp.float32, -bound, bound)
        b = jax.random.uniform(k_b, (1,), jnp.float32, -bound, bound)
        return d1, d2, e1, e2, w, b

    # Case 1: tiny batch (single block), bf16 embeddings.
    args1 = make_inputs(8, jax.random.fold_in(key, 1))
    out1 = author_classifier_forward(*args1)
    jax.block_until_ready(out1)
    ref1 = _reference(*args1)
    assert out1.shape == (8, 1)
    assert jnp.allclose(out1, ref1, atol=1e-3, rtol=1e-3)

    # Case 2: batch not a multiple of the tile — exercises the unpadded
    # partial-block masking path and an nb>=2 parallel batch grid.
    args2 = make_inputs(200, jax.random.fold_in(key, 2))
    out2 = author_classifier_forward(*args2)
    jax.block_until_ready(out2)
    ref2 = _reference(*args2)
    assert out2.shape == (200, 1)
    assert jnp.allclose(out2, ref2, atol=1e-3, rtol=1e-3)

    print("KERNEL_OK")
</pallas_src>

<mosaic_0001>
module attributes {stable_mosaic.version = 11 : i64} {
  func.func @_classifier_kernel(%arg0: i32, %arg1: memref<8x128xbf16, #tpu.memory_space<vmem>>, %arg2: memref<8x128xbf16, #tpu.memory_space<vmem>>, %arg3: memref<8x128xbf16, #tpu.memory_space<vmem>>, %arg4: memref<8x128xbf16, #tpu.memory_space<vmem>>, %arg5: memref<4x128xf32, #tpu.memory_space<vmem>>, %arg6: memref<1xf32, #tpu.memory_space<smem>>, %arg7: memref<1x8xf32, #tpu.memory_space<vmem>>) attributes {dimension_semantics = [#tpu.dimension_semantics<parallel>], iteration_bounds = array<i64: 1>, scalar_prefetch = 0 : i64, scratch_operands = 0 : i64, tpu.core_type = #tpu.core_type<tc>, window_params = [{transform_indices = @transform_0, window_bounds = array<i64: 8, 128>}, {transform_indices = @transform_1, window_bounds = array<i64: 8, 128>}, {transform_indices = @transform_2, window_bounds = array<i64: 8, 128>}, {transform_indices = @transform_3, window_bounds = array<i64: 8, 128>}, {pipeline_mode = #tpu.pipeline_mode<synchronous>, transform_indices = @transform_4, window_bounds = array<i64: 4, 128>}, {transform_indices = @transform_5, window_bounds = array<i64: 1>}, {transform_indices = @transform_6, window_bounds = array<i64: 1, 8>}]} {
    %c0 = arith.constant 0 : index
    %c0_0 = arith.constant 0 : index
    %0 = vector.load %arg5[%c0, %c0_0] : memref<4x128xf32, #tpu.memory_space<vmem>>, vector<4x128xf32>
    %c0_1 = arith.constant 0 : index
    %c0_2 = arith.constant 0 : index
    %1 = vector.load %arg1[%c0_1, %c0_2] : memref<8x128xbf16, #tpu.memory_space<vmem>>, vector<8x128xbf16>
    %2 = arith.extf %1 : vector<8x128xbf16> to vector<8x128xf32>
    %3 = vector.extract_strided_slice %0 {offsets = [0, 0], sizes = [1, 128], strides = [1, 1]} : vector<4x128xf32> to vector<1x128xf32>
    %4 = vector.broadcast %3 : vector<1x128xf32> to vector<8x128xf32>
    %5 = arith.mulf %2, %4 : vector<8x128xf32>
    %c0_3 = arith.constant 0 : index
    %c0_4 = arith.constant 0 : index
    %6 = vector.load %arg2[%c0_3, %c0_4] : memref<8x128xbf16, #tpu.memory_space<vmem>>, vector<8x128xbf16>
    %7 = arith.extf %6 : vector<8x128xbf16> to vector<8x128xf32>
    %8 = vector.extract_strided_slice %0 {offsets = [1, 0], sizes = [1, 128], strides = [1, 1]} : vector<4x128xf32> to vector<1x128xf32>
    %9 = vector.broadcast %8 : vector<1x128xf32> to vector<8x128xf32>
    %10 = arith.mulf %7, %9 : vector<8x128xf32>
    %11 = arith.addf %5, %10 : vector<8x128xf32>
    %c0_5 = arith.constant 0 : index
    %c0_6 = arith.constant 0 : index
    %12 = vector.load %arg3[%c0_5, %c0_6] : memref<8x128xbf16, #tpu.memory_space<vmem>>, vector<8x128xbf16>
    %13 = arith.extf %12 : vector<8x128xbf16> to vector<8x128xf32>
    %14 = vector.extract_strided_slice %0 {offsets = [2, 0], sizes = [1, 128], strides = [1, 1]} : vector<4x128xf32> to vector<1x128xf32>
    %15 = vector.broadcast %14 : vector<1x128xf32> to vector<8x128xf32>
    %16 = arith.mulf %13, %15 : vector<8x128xf32>
    %17 = arith.addf %11, %16 : vector<8x128xf32>
    %c0_7 = arith.constant 0 : index
    %c0_8 = arith.constant 0 : index
    %18 = vector.load %arg4[%c0_7, %c0_8] : memref<8x128xbf16, #tpu.memory_space<vmem>>, vector<8x128xbf16>
    %19 = arith.extf %18 : vector<8x128xbf16> to vector<8x128xf32>
    %20 = vector.extract_strided_slice %0 {offsets = [3, 0], sizes = [1, 128], strides = [1, 1]} : vector<4x128xf32> to vector<1x128xf32>
    %21 = vector.broadcast %20 : vector<1x128xf32> to vector<8x128xf32>
    %22 = arith.mulf %19, %21 : vector<8x128xf32>
    %23 = arith.addf %17, %22 : vector<8x128xf32>
    %cst = arith.constant dense<0.000000e+00> : vector<8xf32>
    %24 = vector.multi_reduction <add>, %23, %cst [1] : vector<8x128xf32> to vector<8xf32>
    %25 = vector.shape_cast %24 : vector<8xf32> to vector<8x1xf32>
    %c0_9 = arith.constant 0 : index
    %26 = memref.load %arg6[%c0_9] : memref<1xf32, #tpu.memory_space<smem>>
    %27 = vector.broadcast %26 : f32 to vector<8x1xf32>
    %28 = arith.addf %25, %27 : vector<8x1xf32>
    %29 = tpu.transpose %28, [1, 0] : vector<8x1xf32> -> vector<1x8xf32>
    %c0_10 = arith.constant 0 : index
    %c0_11 = arith.constant 0 : index
    %30 = vector.load %arg7[%c0_10, %c0_11] : memref<1x8xf32, #tpu.memory_space<vmem>>, vector<1x8xf32>
    tpu.vector_store %arg7[%c0_10, %c0_11], %29 {strides = array<i32>} : memref<1x8xf32, #tpu.memory_space<vmem>>, vector<1x8xf32>,
    return
  }
  func.func @transform_0(%arg0: i32) -> (i32, i32) {
    %c0_i32 = arith.constant 0 : i32
    %c0_i32_0 = arith.constant 0 : i32
    return %arg0, %c0_i32 : i32, i32
  }
  func.func @transform_1(%arg0: i32) -> (i32, i32) {
    %c0_i32 = arith.constant 0 : i32
    %c0_i32_0 = arith.constant 0 : i32
    return %arg0, %c0_i32 : i32, i32
  }
  func.func @transform_2(%arg0: i32) -> (i32, i32) {
    %c0_i32 = arith.constant 0 : i32
    %c0_i32_0 = arith.constant 0 : i32
    return %arg0, %c0_i32 : i32, i32
  }
  func.func @transform_3(%arg0: i32) -> (i32, i32) {
    %c0_i32 = arith.constant 0 : i32
    %c0_i32_0 = arith.constant 0 : i32
    return %arg0, %c0_i32 : i32, i32
  }
  func.func @transform_4(%arg0: i32) -> (i32, i32) {
    %c0_i32 = arith.constant 0 : i32
    %c0_i32_0 = arith.constant 0 : i32
    %c0_i32_1 = arith.constant 0 : i32
    return %c0_i32, %c0_i32_0 : i32, i32
  }
  func.func @transform_5(%arg0: i32) -> i32 {
    %c0_i32 = arith.constant 0 : i32
    %c0_i32_0 = arith.constant 0 : i32
    return %c0_i32 : i32
  }
  func.func @transform_6(%arg0: i32) -> (i32, i32) {
    %c0_i32 = arith.constant 0 : i32
    %c0_i32_0 = arith.constant 0 : i32
    return %c0_i32, %arg0 : i32, i32
  }
}

</mosaic_0001>

<bundles_post_ra>
// kernel: author_classifier_forward.1
= control target key start
LH: loop header
LB: loop body
LE: loop exit
PB: predicated region body
PF: predicated region fallthrough
CT: control target
= control target key end

     0   :  { %12 = vsyncpa [#allocation4], 0  ;;  %s353_s0 = inlined_call_operand.hbm [shape: bf16[8,128], index: 0, kind: input, shape index: {}]   ;;  %s354_s1 = inlined_call_operand.hbm [shape: bf16[8,128], index: 1, kind: input, shape index: {}]   ;;  %s355_s2 = inlined_call_operand.vmem [shape: bf16[8,128], index: 2, kind: input, shape index: {}]   ;;  %s356_s3 = inlined_call_operand.hbm [shape: bf16[8,128], index: 3, kind: input, shape index: {}]   ;;  %s357_s4 = inlined_call_operand.hbm [shape: f32[4,128], index: 4, kind: input, shape index: {}]   ;;  %s358_s5 = inlined_call_operand.<no memory space> [shape: f32[1], index: 5, kind: input, shape index: {}]   ;;  %s359_s6 = inlined_call_operand.hbm [shape: f32[1,8], index: 6, kind: output, shape index: {}]  }
   0x1   :  { %13 = vsyncpa [#allocation7], 0 }
   0x2   :  { %14 = vsyncpa [#allocation10], 0  ;;  %s32_s23 = sshll.u32 %s354_s1, 4  ;;  %s33_s23 = int_to_ptr.hbm [resolvable:$true] %s32_s23 }
   0x3   :  { %15 = vsyncpa [#allocation5], 0  ;;  %s292_s24 = smov [#allocation6]   ;;  %s21_s28 = sshll.u32 %s353_s0, 4  ;;  %s22_s28 = int_to_ptr.hbm [resolvable:$true] %s21_s28 }
   0x4   :  { %s34_s25 = sshll.u32 %s292_s24, 4  ;;  %s293_s29 = smov [#allocation3]   ;;  %s35_s25 = int_to_ptr.vmem [resolvable:$true] %s34_s25 }
   0x5   :  { %37 = dma.hbm_to_vmem [thread:$0]  %s33_s23, 64, %s35_s25, [#allocation7]  }
   0x6   :  { %s23_s30 = sshll.u32 %s293_s29, 4  ;;  %s45_s9 = sshll.u32 %s356_s3, 4  ;;  %s24_s30 = int_to_ptr.vmem [resolvable:$true] %s23_s30  ;;  %s46_s9 = int_to_ptr.hbm [resolvable:$true] %s45_s9 }
   0x7   :  { %26 = dma.hbm_to_vmem [thread:$0]  %s22_s28, 64, %s24_s30, [#allocation4]  }
   0x8   :  { %s56_s11 = sshll.u32 %s357_s4, 4  ;;  %s294_s12 = smov [#allocation8]   ;;  %s57_s11 = int_to_ptr.hbm [resolvable:$true] %s56_s11 }
   0x9   :  { %s47_s13 = sshll.u32 %s294_s12, 4  ;;  %s295_s0 = smov [#allocation9]   ;;  %s48_s13 = int_to_ptr.vmem [resolvable:$true] %s47_s13 }
   0xa   :  { %50 = dma.hbm_to_vmem [thread:$0]  %s46_s9, 64, %s48_s13, [#allocation7]  }
   0xb   :  { %s58_s14 = sshll.u32 %s295_s0, 4  ;;  %s59_s14 = int_to_ptr.vmem [resolvable:$true] %s58_s14 }
   0xc   :  { %61 = dma.hbm_to_vmem [thread:$0]  %s57_s11, 64, %s59_s14, [#allocation10]  }
   0xd   :  { %284 = dma.done.wait [#allocation4], 64  }
   0xe   :  { %285 = vsyncadd [#allocation4], 4294967232 }
   0xf   :  { %286 = dma.done.wait [#allocation7], 128  }
  0x10   :  { %287 = vsyncadd [#allocation7], 4294967168 }
  0x11   :  { %288 = dma.done.wait [#allocation10], 64  }
  0x12   :  { %289 = vsyncadd [#allocation10], 4294967232  ;;  %v80_v0 = vld [vmem:[#allocation9] sm:$0xf]  ;;  %v81_v1 = vld [vmem:[#allocation3] sm:$0xf]  ;;  %v103_v20 = vstv %s358_s5 }
  0x13   :  { %v85_v2 = vld [vmem:[#allocation6] sm:$0xf]  ;;  %v82_v3 = vunpack.c.l.bf16 %v81_v1  ;;  %v83_v4 = vperm.slane %v80_v0, 0  ;;  %v87_v6 = vperm.slane %v80_v0, 1  ;;  %v90_v7 = vld [vmem:[%s355_s2] sm:$0xf] }
  0x14   :  { %v86_v5 = vunpack.c.l.bf16 %v85_v2  ;;  %v95_v8 = vld [vmem:[#allocation8] sm:$0xf]  ;;  %v91_v9 = vunpack.c.l.bf16 %v90_v7  ;;  %v92_v10 = vperm.slane %v80_v0, 2  ;;  %v97_v12 = vperm.slane %v80_v0, 3  ;;  %s296_s2 = smov [#allocation11]   ;;  %s146_s20 = sshll.u32 %s359_s6, 4  ;;  %s147_s20 = int_to_ptr.hbm [resolvable:$true] %s146_s20 }
  0x15   :  { %v96_v11 = vunpack.c.l.bf16 %v95_v8  ;;  %v84_v13 = vmul.f32 %v83_v4, %v82_v3  ;;  %s144_s17 = sshll.u32 %s296_s2, 4  ;;  %vm137_vm0 = vcmask 57344   ;;  %s145_s17 = int_to_ptr.vmem [resolvable:$true] %s144_s17 }
  0x16   :  { %v88_v14 = vmul.f32 %v87_v6, %v86_v5  ;;  %v93_v15 = vmul.f32 %v92_v10, %v91_v9 }
  0x17   :  { %v98_v17 = vmul.f32 %v97_v12, %v96_v11 }
  0x18   :  { %v89_v16 = vadd.f32 %v88_v14, %v84_v13 }
  0x1a   :  { %v94_v18 = vadd.f32 %v93_v15, %v89_v16 }
  0x1c   :  { %v99_v19 = vadd.f32 %v98_v17, %v94_v18 }
  0x1e   :  { %100 = vadd.xlane.f32.xlu0 %v99_v19 }
  0x91   :  { %v101_v21 = vpop.xlane.xlu0 %100 }
  0x92   :  { %v104_v22 = vadd.f32 %v103_v20, %v101_v21 }
  0x94   :  { %105 = vxpose.xlu0.b32.start.end [1/1] (short) (narrow) %v104_v22, 8 }
 0x138   :  { %v121_v23 = vpop.trf.xlu0 }
 0x139   :  { %138 = vst.msk [vmem:[#allocation11] sm:$0x1] %vm137_vm0, %v121_v23 }
 0x13a   :  { %149 = dma.vmem_to_hbm [thread:$0]  %s145_s17, 16, %s147_s20, [#allocation5]  }
 0x13b   :  { %290 = dma.done.wait [#allocation5], 16  }
 0x13c   :  { %291 = vsyncadd [#allocation5], 4294967280 }
 0x13d   :  { %154 = vsyncpa [#allocation4], 1 }
 0x13e   :  { %155 = vsyncpa [#allocation7], 1 }
 0x13f   :  { %156 = vsyncpa [#allocation10], 1 }
 0x140   :  { %157 = vsyncpa [#allocation5], 1 }

</bundles_post_ra>
